<compile_context>
chip_gen: v7x
topology: tpu7x:2x2x1
jax: 0.10.0
libtpu: 0.0.40
codegen_flags: <defaults>
</compile_context>

<pallas_src>
import functools

import jax
import jax.numpy as jnp
from jax import lax
from jax.experimental import pallas as pl
from jax.experimental.pallas import tpu as pltpu

# ---- module "globals" (shapes follow the PyTorch __init__) ----
VOCAB_SIZE = 16
EMBEDDING_SIZE = 2            # embedding_dim=2 == conv kernel width
SEQUENCE_LENGTH = 8
FILTER_SIZES = (2, 3, 4)
NUM_FILTERS = 4
NUM_CLASS = 3
NUM_FILTERS_TOTAL = NUM_FILTERS * len(FILTER_SIZES)

MAX_FS = max(FILTER_SIZES)
L_MAX = SEQUENCE_LENGTH - min(FILTER_SIZES) + 1      # 7 conv positions kept
K_IM2COL = MAX_FS * EMBEDDING_SIZE + 1               # +1 ones-column for bias


def textcnn_kernel(cols_ref, wconv_ref, lin_ref, out_ref, *, tb):
    """One batch tile: fused conv matmul -> ReLU -> masked max-pool -> linear."""
    x = cols_ref[...]                                   # (L_MAX*tb, K)
    w = wconv_ref[...]                                  # (K, 12) fused conv W+b
    h = jnp.dot(x, w, preferred_element_type=jnp.float32)   # (L_MAX*tb, 12)
    h = jnp.maximum(h, 0.0)                             # ReLU (f32 epilogue)

    # Max-pool over conv positions.  Position p of branch i is only valid for
    # p < S - fs_i + 1; later positions used zero-padded rows -> mask to 0
    # (exact: ReLU output >= 0, so a 0 candidate never changes the max).
    col = lax.broadcasted_iota(jnp.int32, (tb, NUM_FILTERS_TOTAL), 1)
    pooled = None
    for p in range(L_MAX):
        hp = h[p * tb:(p + 1) * tb, :]                  # sublane-aligned slice
        valid_cols = [p < SEQUENCE_LENGTH - fs + 1 for fs in FILTER_SIZES]
        if not all(valid_cols):
            vmask = None
            for i, ok in enumerate(valid_cols):
                if ok:
                    m = (col >= i * NUM_FILTERS) & (col < (i + 1) * NUM_FILTERS)
                    vmask = m if vmask is None else (vmask | m)
            hp = jnp.where(vmask, hp, 0.0)
        pooled = hp if pooled is None else jnp.maximum(pooled, hp)

    w_lin = lin_ref[0:NUM_FILTERS_TOTAL, :]             # (12, 3) pre-transposed
    b_lin = lin_ref[NUM_FILTERS_TOTAL:NUM_FILTERS_TOTAL + 1, :]  # (1, 3)
    out_ref[...] = (jnp.dot(pooled, w_lin, preferred_element_type=jnp.float32)
                    + b_lin)


def fuse_params(conv_ws, conv_bs, lin_w, lin_b, compute_dtype):
    """Pack all parameters into two small arrays (fused conv W+b, linear W+b)."""
    wf = jnp.zeros((K_IM2COL, NUM_FILTERS_TOTAL), jnp.float32)
    for i, fs in enumerate(FILTER_SIZES):
        c0 = i * NUM_FILTERS
        # (F, fs*E) -> transposed into rows [0, fs*E) of this branch's columns.
        wf = wf.at[0:fs * EMBEDDING_SIZE, c0:c0 + NUM_FILTERS].set(conv_ws[i].T)
        # conv bias goes in the ones-column row.
        wf = wf.at[K_IM2COL - 1, c0:c0 + NUM_FILTERS].set(conv_bs[i].reshape(-1))
    lin_packed = jnp.concatenate(
        [lin_w.T, lin_b.reshape(1, NUM_CLASS)], axis=0).astype(jnp.float32)
    return wf.astype(compute_dtype), lin_packed


def textcnn_forward(emb_x, conv_ws, conv_bs, lin_w, lin_b, *, tb=64,
                    compute_dtype=jnp.float32):
    """emb_x: (B, S, E) f32.  Returns logits (B, NUM_CLASS) f32."""
    assert tb % 8 == 0, "batch tile must be sublane-aligned"
    B = emb_x.shape[0]
    n_tiles = max(1, -(-B // tb))
    b_pad = n_tiles * tb

    # ---- wrapper-side layout plumbing (im2col slab), not compute ----
    emb_p = jnp.pad(emb_x, ((0, b_pad - B), (0, MAX_FS - 1), (0, 0)))
    cols = jnp.concatenate(
        [emb_p[:, t:t + L_MAX, :] for t in range(MAX_FS)], axis=-1)
    cols = jnp.concatenate(
        [cols, jnp.ones((b_pad, L_MAX, 1), cols.dtype)], axis=-1)   # (B', L, K)
    # Reorder rows to (tile, position, local_batch): each grid step then sees a
    # contiguous lane-dense (L_MAX*tb, K) slab whose position groups are
    # sublane-aligned, so the kernel needs no reshape/transpose at all.
    cols = cols.reshape(n_tiles, tb, L_MAX, K_IM2COL)
    cols = jnp.transpose(cols, (0, 2, 1, 3)).reshape(
        n_tiles * L_MAX * tb, K_IM2COL).astype(compute_dtype)

    w_fused, lin_packed = fuse_params(conv_ws, conv_bs, lin_w, lin_b,
                                      compute_dtype)

    kernel = functools.partial(textcnn_kernel, tb=tb)
    out = pl.pallas_call(
        kernel,
        out_shape=jax.ShapeDtypeStruct((b_pad, NUM_CLASS), jnp.float32),
        grid=(n_tiles,),
        in_specs=[
            pl.BlockSpec((L_MAX * tb, K_IM2COL), lambda i: (i, 0)),
            pl.BlockSpec((K_IM2COL, NUM_FILTERS_TOTAL), lambda i: (0, 0)),
            pl.BlockSpec((NUM_FILTERS_TOTAL + 1, NUM_CLASS), lambda i: (0, 0)),
        ],
        out_specs=pl.BlockSpec((tb, NUM_CLASS), lambda i: (i, 0)),
        compiler_params=pltpu.CompilerParams(
            dimension_semantics=("parallel",)),
    )(cols, w_fused, lin_packed)
    return out[:B]


def reference_forward(emb_x, conv_ws, conv_bs, lin_w, lin_b):
    """Pure-JAX reference matching the PyTorch forward semantics."""
    pooled = []
    for i, fs in enumerate(FILTER_SIZES):
        L = SEQUENCE_LENGTH - fs + 1
        cols = jnp.concatenate([emb_x[:, t:t + L, :] for t in range(fs)], axis=-1)
        h = jnp.einsum("blk,fk->blf", cols, conv_ws[i]) + conv_bs[i].reshape(1, 1, -1)
        h = jnp.maximum(h, 0.0)
        pooled.append(jnp.max(h, axis=1))
    h_pool = jnp.concatenate(pooled, axis=-1)
    return h_pool @ lin_w.T + lin_b.reshape(1, -1)


if __name__ == "__main__":
    BATCH = 256                                   # batch-tiled: grid = (4,) of 64
    key = jax.random.PRNGKey(0)
    k_tok, k_emb, k_lin, *k_convs = jax.random.split(key, 3 + len(FILTER_SIZES))

    # deterministic synthetic parameters (shapes follow the PyTorch __init__)
    emb_table = 0.1 * jax.random.normal(k_emb, (VOCAB_SIZE, EMBEDDING_SIZE),
                                        jnp.float32)
    conv_ws, conv_bs = [], []
    for i, fs in enumerate(FILTER_SIZES):
        kw, kb = jax.random.split(k_convs[i])
        # nn.Conv2d(1, F, (fs, E)) weight (F,1,fs,E) -> flat (F, fs*E)
        conv_ws.append(0.1 * jax.random.normal(
            kw, (NUM_FILTERS, fs * EMBEDDING_SIZE), jnp.float32))
        conv_bs.append(0.05 * jax.random.normal(kb, (NUM_FILTERS,), jnp.float32))
    lin_w = 0.1 * jax.random.normal(k_lin, (NUM_CLASS, NUM_FILTERS_TOTAL),
                                    jnp.float32)
    lin_b = jnp.ones((NUM_CLASS,), jnp.float32)   # self.Bias = torch.ones([num_class])

    # TODO(synk): the embedding gather (nn.Embedding) stays in XLA; a Pallas
    # DMA-gather is not worthwhile at vocab=16 / emb=2.
    X = jax.random.randint(k_tok, (BATCH, SEQUENCE_LENGTH), 0, VOCAB_SIZE,
                           jnp.int32)
    emb_x = emb_table[X]                          # (B, S, E) float32

    out = textcnn_forward(emb_x, conv_ws, conv_bs, lin_w, lin_b, tb=64)
    out = jax.block_until_ready(out)

    ref = reference_forward(emb_x, conv_ws, conv_bs, lin_w, lin_b)
    assert out.shape == (BATCH, NUM_CLASS)
    assert jnp.allclose(out, ref, atol=1e-5, rtol=1e-5)
    print("KERNEL_OK")
</pallas_src>

<mosaic_0001>
module attributes {stable_mosaic.version = 11 : i64} {
  func.func @textcnn_kernel(%arg0: i32, %arg1: memref<448x9xf32, #tpu.memory_space<vmem>>, %arg2: memref<9x12xf32, #tpu.memory_space<vmem>>, %arg3: memref<13x3xf32, #tpu.memory_space<vmem>>, %arg4: memref<64x3xf32, #tpu.memory_space<vmem>>) attributes {dimension_semantics = [#tpu.dimension_semantics<parallel>], iteration_bounds = array<i64: 4>, scalar_prefetch = 0 : i64, scratch_operands = 0 : i64, tpu.core_type = #tpu.core_type<tc>, window_params = [{transform_indices = @transform_0, window_bounds = array<i64: 448, 9>}, {pipeline_mode = #tpu.pipeline_mode<synchronous>, transform_indices = @transform_1, window_bounds = array<i64: 9, 12>}, {pipeline_mode = #tpu.pipeline_mode<synchronous>, transform_indices = @transform_2, window_bounds = array<i64: 13, 3>}, {transform_indices = @transform_3, window_bounds = array<i64: 64, 3>}]} {
    %c0 = arith.constant 0 : index
    %c0_0 = arith.constant 0 : index
    %0 = vector.load %arg1[%c0, %c0_0] : memref<448x9xf32, #tpu.memory_space<vmem>>, vector<448x9xf32>
    %c0_1 = arith.constant 0 : index
    %c0_2 = arith.constant 0 : index
    %1 = vector.load %arg2[%c0_1, %c0_2] : memref<9x12xf32, #tpu.memory_space<vmem>>, vector<9x12xf32>
    %cst = arith.constant dense<0.000000e+00> : vector<448x12xf32>
    %2 = tpu.matmul %0, %1, %cst {dimension_numbers = #tpu.dot_dimension_numbers<[1], [0], [0], [1], [0, 0, 1, 1], [], []>} : vector<448x9xf32>, vector<9x12xf32>, vector<448x12xf32> -> vector<448x12xf32>
    %cst_3 = arith.constant 0.000000e+00 : f32
    %3 = vector.broadcast %cst_3 : f32 to vector<448x12xf32>
    %4 = arith.maximumf %2, %3 : vector<448x12xf32>
    %5 = tpu.iota {dimensions = array<i32: 1>} : vector<64x12xi32>
    %6 = vector.extract_strided_slice %4 {offsets = [0, 0], sizes = [64, 12], strides = [1, 1]} : vector<448x12xf32> to vector<64x12xf32>
    %7 = vector.extract_strided_slice %4 {offsets = [64, 0], sizes = [64, 12], strides = [1, 1]} : vector<448x12xf32> to vector<64x12xf32>
    %8 = arith.maximumf %6, %7 : vector<64x12xf32>
    %9 = vector.extract_strided_slice %4 {offsets = [128, 0], sizes = [64, 12], strides = [1, 1]} : vector<448x12xf32> to vector<64x12xf32>
    %10 = arith.maximumf %8, %9 : vector<64x12xf32>
    %11 = vector.extract_strided_slice %4 {offsets = [192, 0], sizes = [64, 12], strides = [1, 1]} : vector<448x12xf32> to vector<64x12xf32>
    %12 = arith.maximumf %10, %11 : vector<64x12xf32>
    %13 = vector.extract_strided_slice %4 {offsets = [256, 0], sizes = [64, 12], strides = [1, 1]} : vector<448x12xf32> to vector<64x12xf32>
    %14 = arith.maximumf %12, %13 : vector<64x12xf32>
    %15 = vector.extract_strided_slice %4 {offsets = [320, 0], sizes = [64, 12], strides = [1, 1]} : vector<448x12xf32> to vector<64x12xf32>
    %c0_i32 = arith.constant 0 : i32
    %16 = vector.broadcast %c0_i32 : i32 to vector<64x12xi32>
    %17 = arith.cmpi sge, %5, %16 : vector<64x12xi32>
    %c4_i32 = arith.constant 4 : i32
    %18 = vector.broadcast %c4_i32 : i32 to vector<64x12xi32>
    %19 = arith.cmpi slt, %5, %18 : vector<64x12xi32>
    %20 = arith.andi %17, %19 : vector<64x12xi1>
    %c4_i32_4 = arith.constant 4 : i32
    %21 = vector.broadcast %c4_i32_4 : i32 to vector<64x12xi32>
    %22 = arith.cmpi sge, %5, %21 : vector<64x12xi32>
    %c8_i32 = arith.constant 8 : i32
    %23 = vector.broadcast %c8_i32 : i32 to vector<64x12xi32>
    %24 = arith.cmpi slt, %5, %23 : vector<64x12xi32>
    %25 = arith.andi %22, %24 : vector<64x12xi1>
    %26 = arith.ori %20, %25 : vector<64x12xi1>
    %cst_5 = arith.constant 0.000000e+00 : f32
    %27 = vector.broadcast %cst_5 : f32 to vector<64x12xf32>
    %28 = arith.select %26, %15, %27 : vector<64x12xi1>, vector<64x12xf32>
    %29 = arith.maximumf %14, %28 : vector<64x12xf32>
    %30 = vector.extract_strided_slice %4 {offsets = [384, 0], sizes = [64, 12], strides = [1, 1]} : vector<448x12xf32> to vector<64x12xf32>
    %c0_i32_6 = arith.constant 0 : i32
    %31 = vector.broadcast %c0_i32_6 : i32 to vector<64x12xi32>
    %32 = arith.cmpi sge, %5, %31 : vector<64x12xi32>
    %c4_i32_7 = arith.constant 4 : i32
    %33 = vector.broadcast %c4_i32_7 : i32 to vector<64x12xi32>
    %34 = arith.cmpi slt, %5, %33 : vector<64x12xi32>
    %35 = arith.andi %32, %34 : vector<64x12xi1>
    %cst_8 = arith.constant 0.000000e+00 : f32
    %36 = vector.broadcast %cst_8 : f32 to vector<64x12xf32>
    %37 = arith.select %35, %30, %36 : vector<64x12xi1>, vector<64x12xf32>
    %38 = arith.maximumf %29, %37 : vector<64x12xf32>
    %c0_9 = arith.constant 0 : index
    %c0_10 = arith.constant 0 : index
    %39 = vector.load %arg3[%c0_9, %c0_10] : memref<13x3xf32, #tpu.memory_space<vmem>>, vector<12x3xf32>
    %c12 = arith.constant 12 : index
    %c0_11 = arith.constant 0 : index
    %40 = vector.load %arg3[%c12, %c0_11] : memref<13x3xf32, #tpu.memory_space<vmem>>, vector<1x3xf32>
    %cst_12 = arith.constant dense<0.000000e+00> : vector<64x3xf32>
    %41 = tpu.matmul %38, %39, %cst_12 {dimension_numbers = #tpu.dot_dimension_numbers<[1], [0], [0], [1], [0, 0, 1, 1], [], []>} : vector<64x12xf32>, vector<12x3xf32>, vector<64x3xf32> -> vector<64x3xf32>
    %42 = vector.broadcast %40 : vector<1x3xf32> to vector<64x3xf32>
    %43 = arith.addf %41, %42 : vector<64x3xf32>
    %c0_13 = arith.constant 0 : index
    %c0_14 = arith.constant 0 : index
    %44 = vector.load %arg4[%c0_13, %c0_14] : memref<64x3xf32, #tpu.memory_space<vmem>>, vector<64x3xf32>
    tpu.vector_store %arg4[%c0_13, %c0_14], %43 {strides = array<i32>} : memref<64x3xf32, #tpu.memory_space<vmem>>, vector<64x3xf32>,
    return
  }
  func.func @transform_0(%arg0: i32) -> (i32, i32) {
    %c0_i32 = arith.constant 0 : i32
    %c0_i32_0 = arith.constant 0 : i32
    return %arg0, %c0_i32 : i32, i32
  }
  func.func @transform_1(%arg0: i32) -> (i32, i32) {
    %c0_i32 = arith.constant 0 : i32
    %c0_i32_0 = arith.constant 0 : i32
    %c0_i32_1 = arith.constant 0 : i32
    return %c0_i32, %c0_i32_0 : i32, i32
  }
  func.func @transform_2(%arg0: i32) -> (i32, i32) {
    %c0_i32 = arith.constant 0 : i32
    %c0_i32_0 = arith.constant 0 : i32
    %c0_i32_1 = arith.constant 0 : i32
    return %c0_i32, %c0_i32_0 : i32, i32
  }
  func.func @transform_3(%arg0: i32) -> (i32, i32) {
    %c0_i32 = arith.constant 0 : i32
    %c0_i32_0 = arith.constant 0 : i32
    return %arg0, %c0_i32 : i32, i32
  }
}

</mosaic_0001>

<bundles_post_ra>
// kernel: tpu_custom_call.1
= control target key start
LH: loop header
LB: loop body
LE: loop exit
PB: predicated region body
PF: predicated region fallthrough
CT: control target
= control target key end

     0   :  { %s1386_s12 = smov 0   ;;  %s1686_s0 = inlined_call_operand.vmem [shape: f32[1792,9], index: 0, kind: input, shape index: {}]   ;;  %s1687_s1 = inlined_call_operand.vmem [shape: f32[9,12], index: 1, kind: input, shape index: {}]   ;;  %s1688_s2 = inlined_call_operand.vmem [shape: f32[13,3], index: 2, kind: input, shape index: {}]   ;;  %s1689_s3 = inlined_call_operand.vmem [shape: f32[256,3], index: 3, kind: output, shape index: {}]  }
   0x1 LB: > { %s1085_s13 = sadd.s32 4294967295, %s1363_s12   ;;  %p1089_p0 = scmp.ge.s32.totalorder %s1363_s12, 1  ;;  %s1363_s12 = sphi %s1386_s12, %s13_s12  }
   0x2   : > { %p138_p1 = scmp.lt.s32.totalorder %s1363_s12, 5 }
   0x4   : > { %p139_p2 = pnand %p1089_p0, %p138_p1 }
   0x5   : > { %v230_v0 = vld [vmem:[%s1687_s1] sm:$0xff] (!%p139_p2)  ;;  %v231_v1 = vld [vmem:[%s1687_s1 + $0x8] sm:$0x1] (!%p139_p2)  ;;  %vm401_vm0 = vcmask (!%p139_p2), 1040384   ;;  %s162_s18 = smul.u32 (!%p139_p2), 56, %s1085_s13  ;;  %vm1365_vm1 = vmmov (!%p139_p2), 1  }
   0x6   : > { %142 = sbr.rel (%p139_p2) target bundleno = 518 (0x206), region = 32  ;;  %v1334_v2 = vpack.c.bf16 (!%p139_p2), %v231_v1, %v230_v0  ;;  %vm1335_vm2 = vmpackc.low (!%p139_p2), %vm401_vm0, %vm1365_vm1  ;;  %vm232_vm3 = vcmask (!%p139_p2), 72704   ;;  %v879_v59 = vld [vmem:[%s1688_s2] sm:$0xff] (!%p139_p2)  ;;  %v880_v60 = vld [vmem:[%s1688_s2 + $0x8] sm:$0xf] (!%p139_p2)  ;;  %vm911_vm4 = vcmask (!%p139_p2), 1043456  }
   0x7   : > { %p163_p3 = scmp.lt.s32.totalorder (!%p139_p2), %s162_s18, 223  ;;  %v1340_v61 = vpack.c.bf16 (!%p139_p2), %v880_v60, %v879_v59  ;;  %vm1341_vm5 = vmpackc.low (!%p139_p2), %vm911_vm4, %vm1365_vm1  ;;  %vm886_vm11 = vcmask (!%p139_p2), 97280   ;;  %s1091_s27 = sshll.u32 (!%p139_p2), %s1085_s13, 3  ;;  %vm1020_vm12 = vcmask (!%p139_p2), 23552  }
   0x8   : > { %1336 = vmatprep.subr.msk.bf16.mxu0 (!%p139_p2), %vm1335_vm2, %v1334_v2  ;;  %1346 = vmatprep.subr.msk.bf16.mxu1 (!%p139_p2), %vm1335_vm2, %v1334_v2  ;;  %p169_p4 = scmp.lt.s32.totalorder (!%p139_p2), %s1091_s27, 31 }
   0x9   : > { %1339 = vmatpush3.bf16.msk.msra.mxu0 (!%p139_p2), %vm1335_vm2, %v1334_v2  ;;  %1347 = vmatpush3.bf16.msk.msra.mxu1 (!%p139_p2), %vm1335_vm2, %v1334_v2 }
   0xa   : > { %1342 = vmatprep.subr.msk.bf16.mxu1 (!%p139_p2), %vm1341_vm5, %v1340_v61 }
   0xd   : > { %s1693_s18 = smov (!%p163_p3, %s162_s18), 223  ;;  %s1695_s27 = smov (!%p169_p4, %s1091_s27), 31 }
   0xe   : > { %s1090_s19 = sshll.u32 %s1693_s18, 3  ;;  %s1092_s28 = sshll.u32 %s1695_s27, 3 }
   0xf   : > { %s1406_s22 = scalar_lea.vmem %s1686_s0, %s1090_s19  ;;  %s172_s6 = scalar_lea.vmem %s1689_s3, %s1092_s28 }
  0x10   : > { %v174_v3 = vld [vmem:[%s1406_s22] sm:$0xff]  ;;  %v175_v4 = vld [vmem:[%s1406_s22 + $0x8] sm:$0xff]  ;;  %v176_v5 = vld [vmem:[%s1406_s22 + $0x10] sm:$0xff] }
  0x11   : > { %1234 = vmatprep.mubr.msk.f32.mxu0 %vm232_vm3, %v174_v3  ;;  %v177_v6 = vld [vmem:[%s1406_s22 + $0x18] sm:$0xff]  ;;  %v206_v7 = vld [vmem:[%s1406_s22 + $0x100] sm:$0xff]  ;;  %v207_v9 = vld [vmem:[%s1406_s22 + $0x108] sm:$0xff] }
  0x12   : > { %1235 = vmatmul.mubr.msk.f32.vlgmr.msra.gmra.mrb[0].mxu0 %vm232_vm3, %v175_v4  ;;  %v178_v8 = vld [vmem:[%s1406_s22 + $0x20] sm:$0xff]  ;;  %1282 = vmatprep.mubr.msk.f32.mxu1 %vm232_vm3, %v206_v7  ;;  %v208_v10 = vld [vmem:[%s1406_s22 + $0x110] sm:$0xff]  ;;  %v209_v11 = vld [vmem:[%s1406_s22 + $0x118] sm:$0xff] }
  0x13   : > { %1237 = vmatprep.mubr.msk.f32.mxu0 %vm232_vm3, %v176_v5  ;;  %1283 = vmatmul.mubr.msk.f32.vlgmr.msra.gmra.mrb[0].mxu1 %vm232_vm3, %v207_v9  ;;  %v179_v12 = vld [vmem:[%s1406_s22 + $0x28] sm:$0xff]  ;;  %v210_v13 = vld [vmem:[%s1406_s22 + $0x120] sm:$0xff]  ;;  %v180_v14 = vld [vmem:[%s1406_s22 + $0x30] sm:$0xff] }
  0x14   : > { %1285 = vmatprep.mubr.msk.f32.mxu1 %vm232_vm3, %v208_v10  ;;  %v211_v15 = vld [vmem:[%s1406_s22 + $0x128] sm:$0xff]  ;;  %v181_v16 = vld [vmem:[%s1406_s22 + $0x38] sm:$0xff]  ;;  %v212_v17 = vld [vmem:[%s1406_s22 + $0x130] sm:$0xff]  ;;  %1345 = vmatpush3.bf16.msk.msra.mxu1 %vm1341_vm5, %v1340_v61 }
  0x15   : > { %v182_v18 = vld [vmem:[%s1406_s22 + $0x40] sm:$0xff]  ;;  %v213_v19 = vld [vmem:[%s1406_s22 + $0x138] sm:$0xff]  ;;  %v183_v20 = vld [vmem:[%s1406_s22 + $0x48] sm:$0xff] }
  0x16   : > { %1238 = vmatmul.mubr.msk.f32.gmra.mrb[2].mxu0 %vm232_vm3, %v177_v6  ;;  %v214_v21 = vld [vmem:[%s1406_s22 + $0x140] sm:$0xff]  ;;  %v184_v22 = vld [vmem:[%s1406_s22 + $0x50] sm:$0xff]  ;;  %v215_v23 = vld [vmem:[%s1406_s22 + $0x148] sm:$0xff] }
  0x17   : > { %1240 = vmatprep.mubr.msk.f32.mxu0 %vm232_vm3, %v178_v8  ;;  %1286 = vmatmul.mubr.msk.f32.gmra.mrb[2].mxu1 %vm232_vm3, %v209_v11  ;;  %v185_v24 = vld [vmem:[%s1406_s22 + $0x58] sm:$0xff]  ;;  %v216_v25 = vld [vmem:[%s1406_s22 + $0x150] sm:$0xff]  ;;  %v186_v26 = vld [vmem:[%s1406_s22 + $0x60] sm:$0xff] }
  0x18   : > { %1288 = vmatprep.mubr.msk.f32.mxu1 %vm232_vm3, %v210_v13  ;;  %v217_v27 = vld [vmem:[%s1406_s22 + $0x158] sm:$0xff]  ;;  %v187_v28 = vld [vmem:[%s1406_s22 + $0x68] sm:$0xff]  ;;  %v218_v29 = vld [vmem:[%s1406_s22 + $0x160] sm:$0xff] }
  0x19   : > { %v188_v30 = vld [vmem:[%s1406_s22 + $0x70] sm:$0xff]  ;;  %v219_v31 = vld [vmem:[%s1406_s22 + $0x168] sm:$0xff]  ;;  %v189_v32 = vld [vmem:[%s1406_s22 + $0x78] sm:$0xff] }
  0x1a   : > { %1241 = vmatmul.mubr.msk.f32.gmra.mrb[4].mxu0 %vm232_vm3, %v179_v12  ;;  %v220_v33 = vld [vmem:[%s1406_s22 + $0x170] sm:$0xff]  ;;  %v190_v34 = vld [vmem:[%s1406_s22 + $0x80] sm:$0xff]  ;;  %v221_v35 = vld [vmem:[%s1406_s22 + $0x178] sm:$0xff] }
  0x1b   : > { %1243 = vmatprep.mubr.msk.f32.mxu0 %vm232_vm3, %v180_v14  ;;  %1289 = vmatmul.mubr.msk.f32.gmra.mrb[4].mxu1 %vm232_vm3, %v211_v15  ;;  %v191_v36 = vld [vmem:[%s1406_s22 + $0x88] sm:$0xff]  ;;  %v222_v37 = vld [vmem:[%s1406_s22 + $0x180] sm:$0xff]  ;;  %v192_v38 = vld [vmem:[%s1406_s22 + $0x90] sm:$0xff] }
  0x1c   : > { %1291 = vmatprep.mubr.msk.f32.mxu1 %vm232_vm3, %v212_v17  ;;  %v223_v39 = vld [vmem:[%s1406_s22 + $0x188] sm:$0xff]  ;;  %v193_v40 = vld [vmem:[%s1406_s22 + $0x98] sm:$0xff]  ;;  %v224_v41 = vld [vmem:[%s1406_s22 + $0x190] sm:$0xff] }
  0x1d   : > { %v194_v42 = vld [vmem:[%s1406_s22 + $0xa0] sm:$0xff]  ;;  %v225_v43 = vld [vmem:[%s1406_s22 + $0x198] sm:$0xff]  ;;  %v195_v44 = vld [vmem:[%s1406_s22 + $0xa8] sm:$0xff] }
  0x1e   : > { %1244 = vmatmul.mubr.msk.f32.gmra.mrb[6].mxu0 %vm232_vm3, %v181_v16  ;;  %v226_v45 = vld [vmem:[%s1406_s22 + $0x1a0] sm:$0xff]  ;;  %v196_v46 = vld [vmem:[%s1406_s22 + $0xb0] sm:$0xff]  ;;  %v227_v47 = vld [vmem:[%s1406_s22 + $0x1a8] sm:$0xff] }
  0x1f   : > { %1246 = vmatprep.mubr.msk.f32.mxu0 %vm232_vm3, %v182_v18  ;;  %1292 = vmatmul.mubr.msk.f32.gmra.mrb[6].mxu1 %vm232_vm3, %v213_v19  ;;  %v197_v48 = vld [vmem:[%s1406_s22 + $0xb8] sm:$0xff]  ;;  %v228_v49 = vld [vmem:[%s1406_s22 + $0x1b0] sm:$0xff]  ;;  %v198_v50 = vld [vmem:[%s1406_s22 + $0xc0] sm:$0xff] }
  0x20   : > { %1294 = vmatprep.mubr.msk.f32.mxu1 %vm232_vm3, %v214_v21  ;;  %v229_v51 = vld [vmem:[%s1406_s22 + $0x1b8] sm:$0xff]  ;;  %v199_v52 = vld [vmem:[%s1406_s22 + $0xc8] sm:$0xff]  ;;  %v200_v53 = vld [vmem:[%s1406_s22 + $0xd0] sm:$0xff] }
  0x21   : > { %v201_v54 = vld [vmem:[%s1406_s22 + $0xd8] sm:$0xff]  ;;  %v202_v55 = vld [vmem:[%s1406_s22 + $0xe0] sm:$0xff]  ;;  %v203_v56 = vld [vmem:[%s1406_s22 + $0xe8] sm:$0xff] }
  0x22   : > { %1247 = vmatmul.mubr.msk.f32.gmra.mrb[8].mxu0 %vm232_vm3, %v183_v20  ;;  %v204_v57 = vld [vmem:[%s1406_s22 + $0xf0] sm:$0xff]  ;;  %v205_v58 = vld [vmem:[%s1406_s22 + $0xf8] sm:$0xff] }
  0x23   : > { %1249 = vmatprep.mubr.msk.f32.mxu0 %vm232_vm3, %v184_v22  ;;  %1295 = vmatmul.mubr.msk.f32.gmra.mrb[8].mxu1 %vm232_vm3, %v215_v23 }
  0x24   : > { %1297 = vmatprep.mubr.msk.f32.mxu1 %vm232_vm3, %v216_v25 }
  0x26   : > { %1250 = vmatmul.mubr.msk.f32.gmra.mrb[10].mxu0 %vm232_vm3, %v185_v24 }
  0x27   : > { %1252 = vmatprep.mubr.msk.f32.mxu0 %vm232_vm3, %v186_v26  ;;  %1298 = vmatmul.mubr.msk.f32.gmra.mrb[10].mxu1 %vm232_vm3, %v217_v27 }
  0x28   : > { %1300 = vmatprep.mubr.msk.f32.mxu1 %vm232_vm3, %v218_v29 }
  0x2a   : > { %1253 = vmatmul.mubr.msk.f32.gmra.mrb[12].mxu0 %vm232_vm3, %v187_v28 }
  0x2b   : > { %1255 = vmatprep.mubr.msk.f32.mxu0 %vm232_vm3, %v188_v30  ;;  %1301 = vmatmul.mubr.msk.f32.gmra.mrb[12].mxu1 %vm232_vm3, %v219_v31 }
  0x2c   : > { %1303 = vmatprep.mubr.msk.f32.mxu1 %vm232_vm3, %v220_v33 }
  0x2e   : > { %1256 = vmatmul.mubr.msk.f32.gmra.mrb[14].mxu0 %vm232_vm3, %v189_v32 }
  0x2f   : > { %1258 = vmatprep.mubr.msk.f32.mxu0 %vm232_vm3, %v190_v34  ;;  %1304 = vmatmul.mubr.msk.f32.gmra.mrb[14].mxu1 %vm232_vm3, %v221_v35 }
  0x30   : > { %1306 = vmatprep.mubr.msk.f32.mxu1 %vm232_vm3, %v222_v37 }
  0x32   : > { %1259 = vmatmul.mubr.msk.f32.gmra.mrb[16].mxu0 %vm232_vm3, %v191_v36 }
  0x33   : > { %1261 = vmatprep.mubr.msk.f32.mxu0 %vm232_vm3, %v192_v38  ;;  %1307 = vmatmul.mubr.msk.f32.gmra.mrb[16].mxu1 %vm232_vm3, %v223_v39 }
  0x34   : > { %1309 = vmatprep.mubr.msk.f32.mxu1 %vm232_vm3, %v224_v41 }
  0x36   : > { %1262 = vmatmul.mubr.msk.f32.gmra.mrb[18].mxu0 %vm232_vm3, %v193_v40 }
  0x37   : > { %1264 = vmatprep.mubr.msk.f32.mxu0 %vm232_vm3, %v194_v42  ;;  %1310 = vmatmul.mubr.msk.f32.gmra.mrb[18].mxu1 %vm232_vm3, %v225_v43 }
  0x38   : > { %1312 = vmatprep.mubr.msk.f32.mxu1 %vm232_vm3, %v226_v45 }
  0x3a   : > { %1265 = vmatmul.mubr.msk.f32.gmra.mrb[20].mxu0 %vm232_vm3, %v195_v44 }
  0x3b   : > { %1267 = vmatprep.mubr.msk.f32.mxu0 %vm232_vm3, %v196_v46  ;;  %1313 = vmatmul.mubr.msk.f32.gmra.mrb[20].mxu1 %vm232_vm3, %v227_v47 }
  0x3c   : > { %1315 = vmatprep.mubr.msk.f32.mxu1 %vm232_vm3, %v228_v49 }
  0x3e   : > { %1268 = vmatmul.mubr.msk.f32.gmra.mrb[22].mxu0 %vm232_vm3, %v197_v48 }
  0x3f   : > { %1270 = vmatprep.mubr.msk.f32.mxu0 %vm232_vm3, %v198_v50  ;;  %1316 = vmatmul.mubr.msk.f32.gmra.mrb[22].mxu1 %vm232_vm3, %v229_v51 }
  0x42   : > { %1271 = vmatmul.mubr.msk.f32.gmra.mrb[24].mxu0 %vm232_vm3, %v199_v52 }
  0x43   : > { %1273 = vmatprep.mubr.msk.f32.mxu0 %vm232_vm3, %v200_v53 }
  0x46   : > { %1274 = vmatmul.mubr.msk.f32.gmra.mrb[26].mxu0 %vm232_vm3, %v201_v54 }
  0x47   : > { %1276 = vmatprep.mubr.msk.f32.mxu0 %vm232_vm3, %v202_v55 }
  0x4a   : > { %1277 = vmatmul.mubr.msk.f32.gmra.mrb[28].mxu0 %vm232_vm3, %v203_v56 }
  0x4b   : > { %1279 = vmatprep.mubr.msk.f32.mxu0 %vm232_vm3, %v204_v57 }
  0x4e   : > { %1280 = vmatmul.mubr.msk.f32.gmra.mrb[30].mxu0 %vm232_vm3, %v205_v58  ;;  %v806_v58 = vlaneseq }
  0xe5   : > { %v1236_v62 = vpop.f32.mrb[0].mxu0 }
  0xe6   : > { %v471_v63 = vpop.f32.mrb[1].mxu0  ;;  %v1527_v0 = vpop.f32.mrb[0].mxu1  ;;  %v751_v15 = vmax.f32 %v1236_v62, 0.0 }
  0xe7   : > { %v1529_v2 = vpop.f32.mrb[1].mxu1  ;;  %v750_v18 = vmax.f32 %v471_v63, 0.0 }
  0xe9   : > { %v1239_v1 = vpop.f32.mrb[2].mxu0 }
  0xea   : > { %v481_v3 = vpop.f32.mrb[3].mxu0  ;;  %v1531_v4 = vpop.f32.mrb[2].mxu1  ;;  %v753_v25 = vmax.f32 %v1239_v1, 0.0 }
  0xeb   : > { %v1533_v6 = vpop.f32.mrb[3].mxu1  ;;  %v752_v28 = vmax.f32 %v481_v3, 0.0 }
  0xed   : > { %v1242_v5 = vpop.f32.mrb[4].mxu0 }
  0xee   : > { %v491_v7 = vpop.f32.mrb[5].mxu0  ;;  %v1535_v8 = vpop.f32.mrb[4].mxu1  ;;  %v755_v35 = vmax.f32 %v1242_v5, 0.0  ;;  %v1563_v5 = vand.u32 127, %v806_v58 }
  0xef   : > { %v1537_v10 = vpop.f32.mrb[5].mxu1  ;;  %v754_v38 = vmax.f32 %v491_v7, 0.0 }
  0xf0   : > { %vm843_vm6 = vcmp.ge.s32.totalorder %v1563_v5, 4  ;;  %vm844_vm7 = vcmp.lt.s32.totalorder %v1563_v5, 8  ;;  %vm841_vm8 = vcmp.lt.s32.totalorder %v1563_v5, 4  ;;  %v1150_v5 = vld [vmem:[%s1688_s2 + $0xc] ss:$0 sm:$0xff] }
  0xf1   : > { %v1245_v9 = vpop.f32.mrb[6].mxu0  ;;  %vm845_vm9 = vmand %vm843_vm6, %vm844_vm7 }
  0xf2   : > { %v501_v11 = vpop.f32.mrb[7].mxu0  ;;  %v1539_v12 = vpop.f32.mrb[6].mxu1  ;;  %v757_v45 = vmax.f32 %v1245_v9, 0.0  ;;  %vm1592_vm10 = vmor %vm841_vm8, %vm845_vm9 }
  0xf3   : > { %v1541_v14 = vpop.f32.mrb[7].mxu1  ;;  %v756_v48 = vmax.f32 %v501_v11, 0.0 }
  0xf5   : > { %v1248_v13 = vpop.f32.mrb[8].mxu0 }
  0xf6   : > { %v759_v16 = vmax.f32 %v1248_v13, 0.0  ;;  %v511_v17 = vpop.f32.mrb[9].mxu0  ;;  %v1543_v21 = vpop.f32.mrb[8].mxu1 }
  0xf7   : > { %v758_v19 = vmax.f32 %v511_v17, 0.0  ;;  %v1545_v24 = vpop.f32.mrb[9].mxu1 }
  0xf8   : > { %v809_v20 = vmax.f32 %v751_v15, %v759_v16 }
  0xf9   : > { %v808_v22 = vmax.f32 %v750_v18, %v758_v19  ;;  %v1251_v23 = vpop.f32.mrb[10].mxu0 }
  0xfa   : > { %v761_v26 = vmax.f32 %v1251_v23, 0.0  ;;  %v521_v27 = vpop.f32.mrb[11].mxu0  ;;  %v1547_v31 = vpop.f32.mrb[10].mxu1 }
  0xfb   : > { %v760_v29 = vmax.f32 %v521_v27, 0.0  ;;  %v1549_v34 = vpop.f32.mrb[11].mxu1 }
  0xfc   : > { %v811_v30 = vmax.f32 %v753_v25, %v761_v26 }
  0xfd   : > { %v810_v32 = vmax.f32 %v752_v28, %v760_v29  ;;  %v1254_v33 = vpop.f32.mrb[12].mxu0 }
  0xfe   : > { %v763_v36 = vmax.f32 %v1254_v33, 0.0  ;;  %v531_v37 = vpop.f32.mrb[13].mxu0  ;;  %v1551_v41 = vpop.f32.mrb[12].mxu1 }
  0xff   : > { %v762_v39 = vmax.f32 %v531_v37, 0.0  ;;  %v1553_v44 = vpop.f32.mrb[13].mxu1  ;;  %v785_v37 = vmax.f32 %v1531_v4, 0.0 }
 0x100   : > { %v813_v40 = vmax.f32 %v755_v35, %v763_v36  ;;  %v782_v36 = vmax.f32 %v1529_v2, 0.0  ;;  %v792_v2 = vmax.f32 %v1549_v34, 0.0 }
 0x101   : > { %v812_v42 = vmax.f32 %v754_v38, %v762_v39  ;;  %v1257_v43 = vpop.f32.mrb[14].mxu0  ;;  %v790_v39 = vmax.f32 %v1545_v24, 0.0 }
 0x102   : > { %v765_v46 = vmax.f32 %v1257_v43, 0.0  ;;  %v541_v47 = vpop.f32.mrb[15].mxu0  ;;  %v1555_v51 = vpop.f32.mrb[14].mxu1  ;;  %v793_v43 = vmax.f32 %v1547_v31, 0.0 }
 0x103   : > { %v764_v49 = vmax.f32 %v541_v47, 0.0  ;;  %v1557_v54 = vpop.f32.mrb[15].mxu1  ;;  %v786_v47 = vmax.f32 %v1537_v10, 0.0  ;;  %v847_v34 = vsel %vm1592_vm10, %v790_v39, 0.0 }
 0x104   : > { %v815_v50 = vmax.f32 %v757_v45, %v765_v46  ;;  %v787_v46 = vmax.f32 %v1535_v8, 0.0  ;;  %v794_v8 = vmax.f32 %v1553_v44, 0.0 }
 0x105   : > { %v814_v52 = vmax.f32 %v756_v48, %v764_v49  ;;  %v1260_v53 = vpop.f32.mrb[16].mxu0  ;;  %v789_v49 = vmax.f32 %v1539_v12, 0.0 }
 0x106   : > { %v767_v55 = vmax.f32 %v1260_v53, 0.0  ;;  %v551_v56 = vpop.f32.mrb[17].mxu0  ;;  %v1559_v60 = vpop.f32.mrb[16].mxu1 }
 0x107   : > { %v766_v57 = vmax.f32 %v551_v56, 0.0  ;;  %v1561_v63 = vpop.f32.mrb[17].mxu1  ;;  %v799_v24 = vmax.f32 %v1559_v60, 0.0  ;;  %v849_v56 = vsel %vm1592_vm10, %v792_v2, 0.0 }
 0x108   : > { %v817_v59 = vmax.f32 %v809_v20, %v767_v55  ;;  %v798_v31 = vmax.f32 %v1561_v63, 0.0  ;;  %v850_v55 = vsel %vm1592_vm10, %v793_v43, 0.0  ;;  %v796_v43 = vmax.f32 %v1557_v54, 0.0 }
 0x109   : > { %v816_v61 = vmax.f32 %v808_v22, %v766_v57  ;;  %v1263_v62 = vpop.f32.mrb[18].mxu0 }
 0x10a   : > { %v769_v1 = vmax.f32 %v1263_v62, 0.0  ;;  %v561_v3 = vpop.f32.mrb[19].mxu0  ;;  %v1565_v11 = vpop.f32.mrb[18].mxu1  ;;  %v864_v62 = vsel %vm841_vm8, %v799_v24, 0.0 }
 0x10b   : > { %v768_v7 = vmax.f32 %v561_v3, 0.0  ;;  %v1569_v16 = vpop.f32.mrb[19].mxu1 }
 0x10c   : > { %v819_v9 = vmax.f32 %v811_v30, %v769_v1  ;;  %v783_v30 = vmax.f32 %v1527_v0, 0.0  ;;  %v800_v3 = vmax.f32 %v1569_v16, 0.0 }
 0x10d   : > { %v1567_v13 = vmax.f32 %v810_v32, %v768_v7  ;;  %v1266_v15 = vpop.f32.mrb[20].mxu0  ;;  %v791_v32 = vmax.f32 %v1543_v21, 0.0 }
 0x10e   : > { %v771_v17 = vmax.f32 %v1266_v15, 0.0  ;;  %v571_v18 = vpop.f32.mrb[21].mxu0  ;;  %v1575_v22 = vpop.f32.mrb[20].mxu1  ;;  %v851_v15 = vsel %vm1592_vm10, %v794_v8, 0.0 }
 0x10f   : > { %v770_v19 = vmax.f32 %v571_v18, 0.0  ;;  %v1579_v26 = vpop.f32.mrb[21].mxu1 }
 0x110   : > { %v1573_v20 = vmax.f32 %v813_v40, %v771_v17 }
 0x111   : > { %v1577_v23 = vmax.f32 %v812_v42, %v770_v19  ;;  %v1269_v25 = vpop.f32.mrb[22].mxu0  ;;  %v784_v42 = vmax.f32 %v1533_v6, 0.0 }
 0x112   : > { %v773_v27 = vmax.f32 %v1269_v25, 0.0  ;;  %v581_v28 = vpop.f32.mrb[23].mxu0  ;;  %v1586_v35 = vpop.f32.mrb[22].mxu1 }
 0x113   : > { %v772_v29 = vmax.f32 %v581_v28, 0.0  ;;  %v1599_v21 = vpop.f32.mrb[23].mxu1  ;;  %v803_v28 = vmax.f32 %v1575_v22, 0.0  ;;  %v805_v54 = vmax.f32 %v1586_v35, 0.0 }
 0x114   : > { %v1584_v33 = vmax.f32 %v815_v50, %v773_v27  ;;  %v848_v50 = vsel %vm1592_vm10, %v791_v32, 0.0 }
 0x115   : > { %v1597_v40 = vmax.f32 %v814_v52, %v772_v29  ;;  %v1272_v0 = vpop.f32.mrb[24].mxu0  ;;  %v795_v52 = vmax.f32 %v1551_v41, 0.0  ;;  %v801_v41 = vmax.f32 %v1565_v11, 0.0 }
 0x116   : > { %v775_v4 = vmax.f32 %v1272_v0, 0.0  ;;  %v591_v45 = vpop.f32.mrb[25].mxu0  ;;  %v802_v0 = vmax.f32 %v1579_v26, 0.0 }
 0x117   : > { %v774_v48 = vmax.f32 %v591_v45, 0.0  ;;  %v852_v7 = vsel %vm1592_vm10, %v795_v52, 0.0  ;;  %v866_v16 = vsel %vm841_vm8, %v801_v41, 0.0 }
 0x118   : > { %v825_v6 = vmax.f32 %v817_v59, %v775_v4 }
 0x119   : > { %v824_v53 = vmax.f32 %v816_v61, %v774_v48  ;;  %v1275_v10 = vpop.f32.mrb[26].mxu0  ;;  %v863_v61 = vsel %vm841_vm8, %v798_v31, 0.0  ;;  %v867_v31 = vsel %vm841_vm8, %v802_v0, 0.0 }
 0x11a   : > { %v833_v57 = vmax.f32 %v825_v6, %v783_v30  ;;  %v777_v58 = vmax.f32 %v1275_v10, 0.0  ;;  %v601_v59 = vpop.f32.mrb[27].mxu0 }
 0x11b   : > { %v832_v60 = vmax.f32 %v824_v53, %v782_v36  ;;  %v776_v63 = vmax.f32 %v601_v59, 0.0 }
 0x11c   : > { %v827_v1 = vmax.f32 %v819_v9, %v777_v58  ;;  %v856_v44 = vmax.f32 %v833_v57, %v848_v50 }
 0x11d   : > { %v826_v17 = vmax.f32 %v1567_v13, %v776_v63  ;;  %v855_v18 = vmax.f32 %v832_v60, %v847_v34  ;;  %v1278_v19 = vpop.f32.mrb[28].mxu0  ;;  %v865_v13 = vsel %vm841_vm8, %v800_v3, 0.0  ;;  %v788_v34 = vmax.f32 %v1541_v14, 0.0 }
 0x11e   : > { %v835_v25 = vmax.f32 %v827_v1, %v785_v37  ;;  %v872_v27 = vmax.f32 %v856_v44, %v864_v62  ;;  %v779_v11 = vmax.f32 %v1278_v19, 0.0  ;;  %v611_v9 = vpop.f32.mrb[29].mxu0  ;;  %v797_v37 = vmax.f32 %v1555_v51, 0.0 }
 0x11f   : > { %v834_v29 = vmax.f32 %v826_v17, %v784_v42  ;;  %v871_v30 = vmax.f32 %v855_v18, %v863_v61  ;;  %v778_v32 = vmax.f32 %v611_v9, 0.0  ;;  %v870_v14 = vsel %vm841_vm8, %v805_v54, 0.0 }
 0x120   : > { %v829_v36 = vmax.f32 %v1573_v20, %v779_v11  ;;  %v858_v39 = vmax.f32 %v835_v25, %v850_v55  ;;  %v868_v20 = vsel %vm841_vm8, %v803_v28, 0.0 }
 0x121   : > { %v828_v22 = vmax.f32 %v1577_v23, %v778_v32  ;;  %v857_v42 = vmax.f32 %v834_v29, %v849_v56  ;;  %v1281_v2 = vpop.f32.mrb[30].mxu0  ;;  %1322 = vmatprep.mubr.msk.f32.mxu1 %vm886_vm11, %v871_v30 }
 0x122   : > { %v837_v4 = vmax.f32 %v829_v36, %v787_v46  ;;  %v874_v45 = vmax.f32 %v858_v39, %v866_v16  ;;  %v781_v48 = vmax.f32 %v1281_v2, 0.0  ;;  %v621_v24 = vpop.f32.mrb[31].mxu0  ;;  %1323 = vmatmul.mubr.msk.f32.vlgmr.msra.gmra.mrb[24].mxu1 %vm886_vm11, %v872_v27  ;;  %v804_v46 = vmax.f32 %v1599_v21, 0.0 }
 0x123   : > { %v836_v26 = vmax.f32 %v828_v22, %v786_v47  ;;  %v873_v50 = vmax.f32 %v857_v42, %v865_v13  ;;  %v780_v51 = vmax.f32 %v621_v24, 0.0 }
 0x124   : > { %v831_v23 = vmax.f32 %v1584_v33, %v781_v48  ;;  %v860_v6 = vmax.f32 %v837_v4, %v852_v7  ;;  %v854_v33 = vsel %vm1592_vm10, %v797_v37, 0.0  ;;  %v869_v12 = vsel %vm841_vm8, %v804_v46, 0.0 }
 0x125   : > { %v830_v52 = vmax.f32 %v1597_v40, %v780_v51  ;;  %v859_v8 = vmax.f32 %v836_v26, %v851_v15  ;;  %1325 = vmatprep.mubr.msk.f32.mxu1 %vm886_vm11, %v873_v50  ;;  %v853_v40 = vsel %vm1592_vm10, %v796_v43, 0.0 }
 0x126   : > { %v839_v47 = vmax.f32 %v831_v23, %v789_v49  ;;  %v876_v53 = vmax.f32 %v860_v6, %v868_v20  ;;  %1326 = vmatmul.mubr.msk.f32.gmra.mrb[26].mxu1 %vm886_vm11, %v874_v45 }
 0x127   : > { %v838_v35 = vmax.f32 %v830_v52, %v788_v34  ;;  %v875_v10 = vmax.f32 %v859_v8, %v867_v31 }
 0x128   : > { %v862_v21 = vmax.f32 %v839_v47, %v854_v33 }
 0x129   : > { %v861_v49 = vmax.f32 %v838_v35, %v853_v40  ;;  %1328 = vmatprep.mubr.msk.f32.mxu1 %vm886_vm11, %v875_v10 }
 0x12a   : > { %v878_v55 = vmax.f32 %v862_v21, %v870_v14  ;;  %1329 = vmatmul.mubr.msk.f32.gmra.mrb[28].mxu1 %vm886_vm11, %v876_v53 }
 0x12b   : > { %v877_v56 = vmax.f32 %v861_v49, %v869_v12 }
 0x12d   : > { %1331 = vmatprep.mubr.msk.f32.mxu1 %vm886_vm11, %v877_v56 }
 0x12e   : > { %1332 = vmatmul.mubr.msk.f32.gmra.mrb[30].mxu1 %vm886_vm11, %v878_v55 }
 0x1f5   : > { %v1324_v38 = vpop.f32.mrb[24].mxu1 }
 0x1f6   : > { %v987_v57 = vadd.f32 %v1324_v38, %v1150_v5  ;;  %v981_v58 = vpop.f32.mrb[25].mxu1 }
 0x1f7   : > { %v982_v59 = vadd.f32 %v1150_v5, %v981_v58 }
 0x1f8   : > { %1022 = vst.msk [vmem:[%s172_s6 + $0x8] sm:$0xff] %vm1020_vm12, %v987_v57 }
 0x1f9   : > { %1021 = vst.msk [vmem:[%s172_s6] sm:$0xff] %vm1020_vm12, %v982_v59  ;;  %v1327_v60 = vpop.f32.mrb[26].mxu1 }
 0x1fa   : > { %v997_v62 = vadd.f32 %v1327_v60, %v1150_v5  ;;  %v991_v63 = vpop.f32.mrb[27].mxu1 }
 0x1fb   : > { %v992_v41 = vadd.f32 %v1150_v5, %v991_v63 }
 0x1fc   : > { %1024 = vst.msk [vmem:[%s172_s6 + $0x18] sm:$0xff] %vm1020_vm12, %v997_v62 }
 0x1fd   : > { %1023 = vst.msk [vmem:[%s172_s6 + $0x10] sm:$0xff] %vm1020_vm12, %v992_v41  ;;  %v1330_v1 = vpop.f32.mrb[28].mxu1 }
 0x1fe   : > { %v1007_v44 = vadd.f32 %v1330_v1, %v1150_v5  ;;  %v1001_v61 = vpop.f32.mrb[29].mxu1 }
 0x1ff   : > { %v1002_v3 = vadd.f32 %v1150_v5, %v1001_v61 }
 0x200   : > { %1026 = vst.msk [vmem:[%s172_s6 + $0x28] sm:$0xff] %vm1020_vm12, %v1007_v44 }
 0x201   : > { %1025 = vst.msk [vmem:[%s172_s6 + $0x20] sm:$0xff] %vm1020_vm12, %v1002_v3  ;;  %v1333_v7 = vpop.f32.mrb[30].mxu1 }
 0x202   : > { %v1017_v15 = vadd.f32 %v1333_v7, %v1150_v5  ;;  %v1011_v17 = vpop.f32.mrb[31].mxu1 }
 0x203   : > { %v1012_v18 = vadd.f32 %v1150_v5, %v1011_v17 }
 0x204   : > { %1028 = vst.msk [vmem:[%s172_s6 + $0x38] sm:$0xff] %vm1020_vm12, %v1017_v15 }
 0x205   : > { %1027 = vst.msk [vmem:[%s172_s6 + $0x30] sm:$0xff] %vm1020_vm12, %v1012_v18 }
 0x206 PF: > { %s13_s12 = sadd.s32 1, %s1363_s12  }
 0x207   : > { %p10_p5 = scmp.ge.s32.totalorder %s13_s12, 6  }
 0x209   :  { %12 = sbr.rel (!%p10_p5) target bundleno = 1 (0x1), region = 62 }

</bundles_post_ra>
